<compile_context>
chip_gen: v5e
topology: v5e:2x2
jax: 0.10.0
libtpu: 0.0.40
codegen_flags: <defaults>
</compile_context>

<pallas_src>
import functools

import jax
import jax.numpy as jnp
from jax import lax
from jax.experimental import pallas as pl
from jax.experimental.pallas import tpu as pltpu


def _round_up(x, m):
    return ((x + m - 1) // m) * m


def network_kernel(x_ref, y_ref, w1t_ref, b1_ref, w2t_ref, b2_ref,
                   loss_ref, acc_ref, *, hw, tile, need_mask):
    """Fused model-forward + squared-error accumulation for one (n, s) tile.

    x_ref:    (Cin,  t)   input tile (spatial on lanes)
    y_ref:    (Cout, t)   target tile
    w1t_ref:  (Chid, Cin) first 1x1 conv weight, transposed
    b1_ref:   (Chid, 1)
    w2t_ref:  (Cout, Chid) second 1x1 conv weight, transposed
    b2_ref:   (Cout, 1)
    loss_ref: (1, 1)      per-batch summed squared error (written on last s step)
    acc_ref:  (Cout, t)   f32 VMEM accumulator (persists across the s axis)
    """
    s = pl.program_id(1)
    last = pl.num_programs(1) - 1

    @pl.when(s == 0)
    def _():
        acc_ref[...] = jnp.zeros_like(acc_ref)

    # model: 1x1 conv -> ReLU -> 1x1 conv, as channel-contracting MXU matmuls.
    x = x_ref[...]
    h = jnp.dot(w1t_ref[...], x, preferred_element_type=jnp.float32) + b1_ref[...]
    h = jnp.maximum(h, 0.0)
    p = jnp.dot(w2t_ref[...], h, preferred_element_type=jnp.float32) + b2_ref[...]

    # loss: accumulate elementwise squared error (no per-step cross-lane reduce).
    diff = p - y_ref[...].astype(jnp.float32)
    sq = diff * diff

    if need_mask:  # static flag: only compiled when HW % t != 0 (tail exists)
        @pl.when(s != last)
        def _():
            acc_ref[...] += sq

        @pl.when(s == last)  # only the last tile can contain out-of-range columns
        def _():
            col = lax.broadcasted_iota(jnp.int32, sq.shape, 1) + s * tile
            acc_ref[...] += jnp.where(col < hw, sq, 0.0)
    else:
        acc_ref[...] += sq

    @pl.when(s == last)
    def _():
        loss_ref[...] = jnp.sum(acc_ref[...]).reshape(1, 1)


def network_forward(x_nchw, y_nchw, w1, b1, w2, b2, img_meta=None, *,
                    t_max=65536, vmem_tile_budget=24 << 20):
    """Equivalent of Network.forward(xs=(x,), ys=(y,), img_meta) -> loss."""
    # TODO(synk): img_meta is metadata-only in the reference loss; unused here.
    del img_meta
    N, Cin, H, W = x_nchw.shape
    Cout = y_nchw.shape[1]
    Chid = w1.shape[1]
    HW = H * W

    # Free reshapes: NCHW -> (N, C, H*W). No transposes, no extra HBM passes.
    x = x_nchw.reshape(N, Cin, HW)
    y = y_nchw.reshape(N, Cout, HW)

    # Channel-first weights so the contraction sits on sublanes, spatial on lanes.
    w1t = w1.T                      # (Chid, Cin)
    b1c = b1.reshape(Chid, 1)
    w2t = w2.T                      # (Cout, Chid)
    b2c = b2.reshape(Cout, 1)

    # --- Spatial tile selection under a VMEM budget (no host padding). -------
    # Per-lane VMEM bytes: double-buffered x & y tiles + the f32 loss accumulator.
    per_lane = (2 * (Cin + Cout) + Cout) * 4
    t_budget = max((vmem_tile_budget // per_lane) // 128 * 128, 128)
    t = min(_round_up(HW, 128), (t_max // 128) * 128, t_budget)
    s_tiles = pl.cdiv(HW, t)
    need_mask = (HW % t) != 0       # tail columns only ever exist in the last tile

    # Scoped-VMEM limit sized to the tiles (defaults: v5e 16 MiB / v6e,v7x 32 MiB);
    # capped below v7x's 64 MiB physical VMEM.
    vmem_needed = per_lane * t + 4 * (w1t.size + w2t.size + Chid + Cout) + (2 << 20)
    vmem_limit = int(min(max(vmem_needed, 16 << 20), 60 << 20))

    kernel = functools.partial(network_kernel, hw=HW, tile=t, need_mask=need_mask)

    flops = 2 * N * HW * (Cin * Chid + Chid * Cout)
    bytes_accessed = (x.size + y.size + w1t.size + w2t.size + Chid + Cout + N) * 4

    loss_partials = pl.pallas_call(
        kernel,
        out_shape=jax.ShapeDtypeStruct((N, 1, 1), jnp.float32),
        grid_spec=pltpu.PrefetchScalarGridSpec(
            num_scalar_prefetch=0,
            grid=(N, s_tiles),
            in_specs=[
                pl.BlockSpec((None, Cin, t), lambda n, s: (n, 0, s)),    # x
                pl.BlockSpec((None, Cout, t), lambda n, s: (n, 0, s)),   # y
                pl.BlockSpec((Chid, Cin), lambda n, s: (0, 0)),          # w1.T (resident)
                pl.BlockSpec((Chid, 1), lambda n, s: (0, 0)),            # b1
                pl.BlockSpec((Cout, Chid), lambda n, s: (0, 0)),         # w2.T
                pl.BlockSpec((Cout, 1), lambda n, s: (0, 0)),            # b2
            ],
            out_specs=pl.BlockSpec((None, 1, 1), lambda n, s: (n, 0, 0)),
            scratch_shapes=[pltpu.VMEM((Cout, t), jnp.float32)],
        ),
        compiler_params=pltpu.CompilerParams(
            # batch axis shardable across TensorCores (v7x megacore);
            # spatial axis is the loss-reduction axis.
            dimension_semantics=("parallel", "arbitrary"),
            vmem_limit_bytes=vmem_limit),
        cost_estimate=pl.CostEstimate(
            flops=flops, transcendentals=0, bytes_accessed=bytes_accessed),
    )(x, y, w1t, b1c, w2t, b2c)

    # MSE over all elements (matches nn.MSELoss(reduction='mean')).
    loss = jnp.sum(loss_partials) / jnp.float32(N * HW * Cout)
    return loss


def _reference(x_nchw, y_nchw, w1, b1, w2, b2):
    N, Cin, H, W = x_nchw.shape
    Chid = w1.shape[1]
    Cout = w2.shape[1]
    x = x_nchw.reshape(N, Cin, H * W)
    y = y_nchw.reshape(N, Cout, H * W)
    h = jnp.maximum(jnp.einsum('nci,ch->nhi', x, w1) + b1.reshape(1, Chid, 1), 0.0)
    p = jnp.einsum('nhi,ho->noi', h, w2) + b2.reshape(1, Cout, 1)
    return jnp.mean((p - y) ** 2)


if __name__ == "__main__":
    key = jax.random.PRNGKey(0)
    kx, ky, k1, k2, k3, k4 = jax.random.split(key, 6)

    N, Cin, H, W = 2, 4, 16, 16
    Chid, Cout = 32, 4

    x = jax.random.normal(kx, (N, Cin, H, W), dtype=jnp.float32)
    y = jax.random.normal(ky, (N, Cout, H, W), dtype=jnp.float32)

    # Deterministic synthetic parameters (1x1 conv weights as (Cin, Cout) matrices)
    w1 = jax.random.normal(k1, (Cin, Chid), dtype=jnp.float32) * 0.1
    b1 = jax.random.normal(k2, (1, Chid), dtype=jnp.float32) * 0.1
    w2 = jax.random.normal(k3, (Chid, Cout), dtype=jnp.float32) * 0.1
    b2 = jax.random.normal(k4, (1, Cout), dtype=jnp.float32) * 0.1

    loss = network_forward(x, y, w1, b1, w2, b2, img_meta={"scale": 1.0})
    loss = jax.block_until_ready(loss)

    ref = _reference(x, y, w1, b1, w2, b2)
    assert jnp.allclose(loss, ref, rtol=1e-5, atol=1e-5), (loss, ref)
    print("KERNEL_OK")
</pallas_src>

<mosaic_0001>
module attributes {stable_mosaic.version = 11 : i64} {
  func.func @network_kernel(%arg0: i32, %arg1: i32, %arg2: memref<1x4x256xf32, #tpu.memory_space<vmem>>, %arg3: memref<1x4x256xf32, #tpu.memory_space<vmem>>, %arg4: memref<32x4xf32, #tpu.memory_space<vmem>>, %arg5: memref<32x1xf32, #tpu.memory_space<vmem>>, %arg6: memref<4x32xf32, #tpu.memory_space<vmem>>, %arg7: memref<4x1xf32, #tpu.memory_space<vmem>>, %arg8: memref<1x1x1xf32, #tpu.memory_space<vmem>>, %arg9: memref<4x256xf32, #tpu.memory_space<vmem>>) attributes {dimension_semantics = [#tpu.dimension_semantics<parallel>, #tpu.dimension_semantics<arbitrary>], iteration_bounds = array<i64: 2, 1>, scalar_prefetch = 0 : i64, scratch_operands = 1 : i64, tpu.core_type = #tpu.core_type<tc>, window_params = [{transform_indices = @transform_0, window_bounds = array<i64: 1, 4, 256>}, {transform_indices = @transform_1, window_bounds = array<i64: 1, 4, 256>}, {pipeline_mode = #tpu.pipeline_mode<synchronous>, transform_indices = @transform_2, window_bounds = array<i64: 32, 4>}, {pipeline_mode = #tpu.pipeline_mode<synchronous>, transform_indices = @transform_3, window_bounds = array<i64: 32, 1>}, {pipeline_mode = #tpu.pipeline_mode<synchronous>, transform_indices = @transform_4, window_bounds = array<i64: 4, 32>}, {pipeline_mode = #tpu.pipeline_mode<synchronous>, transform_indices = @transform_5, window_bounds = array<i64: 4, 1>}, {transform_indices = @transform_6, window_bounds = array<i64: 1, 1, 1>}]} {
    %c0_i32 = arith.constant 0 : i32
    %0 = arith.cmpi eq, %arg1, %c0_i32 : i32
    %1 = arith.extui %0 : i1 to i32
    %c0_i32_0 = arith.constant 0 : i32
    %2 = arith.cmpi ne, %1, %c0_i32_0 : i32
    scf.if %2 {
      %cst_22 = arith.constant 0.000000e+00 : f32
      %27 = vector.broadcast %cst_22 : f32 to vector<4x256xf32>
      %c0_23 = arith.constant 0 : index
      %c0_24 = arith.constant 0 : index
      %28 = vector.load %arg9[%c0_23, %c0_24] : memref<4x256xf32, #tpu.memory_space<vmem>>, vector<4x256xf32>
      tpu.vector_store %arg9[%c0_23, %c0_24], %27 {strides = array<i32>} : memref<4x256xf32, #tpu.memory_space<vmem>>, vector<4x256xf32>,
    } else {
    }
    %c0 = arith.constant 0 : index
    %c0_1 = arith.constant 0 : index
    %c0_2 = arith.constant 0 : index
    %3 = vector.load %arg2[%c0, %c0_1, %c0_2] : memref<1x4x256xf32, #tpu.memory_space<vmem>>, vector<1x4x256xf32>
    %4 = vector.shape_cast %3 : vector<1x4x256xf32> to vector<4x256xf32>
    %c0_3 = arith.constant 0 : index
    %c0_4 = arith.constant 0 : index
    %5 = vector.load %arg4[%c0_3, %c0_4] : memref<32x4xf32, #tpu.memory_space<vmem>>, vector<32x4xf32>
    %cst = arith.constant dense<0.000000e+00> : vector<32x256xf32>
    %6 = tpu.matmul %5, %4, %cst {dimension_numbers = #tpu.dot_dimension_numbers<[1], [0], [0], [1], [0, 0, 1, 1], [], []>} : vector<32x4xf32>, vector<4x256xf32>, vector<32x256xf32> -> vector<32x256xf32>
    %c0_5 = arith.constant 0 : index
    %c0_6 = arith.constant 0 : index
    %7 = vector.load %arg5[%c0_5, %c0_6] : memref<32x1xf32, #tpu.memory_space<vmem>>, vector<32x1xf32>
    %8 = vector.broadcast %7 : vector<32x1xf32> to vector<32x256xf32>
    %9 = arith.addf %6, %8 : vector<32x256xf32>
    %cst_7 = arith.constant 0.000000e+00 : f32
    %10 = vector.broadcast %cst_7 : f32 to vector<32x256xf32>
    %11 = arith.maximumf %9, %10 : vector<32x256xf32>
    %c0_8 = arith.constant 0 : index
    %c0_9 = arith.constant 0 : index
    %12 = vector.load %arg6[%c0_8, %c0_9] : memref<4x32xf32, #tpu.memory_space<vmem>>, vector<4x32xf32>
    %cst_10 = arith.constant dense<0.000000e+00> : vector<4x256xf32>
    %13 = tpu.matmul %12, %11, %cst_10 {dimension_numbers = #tpu.dot_dimension_numbers<[1], [0], [0], [1], [0, 0, 1, 1], [], []>} : vector<4x32xf32>, vector<32x256xf32>, vector<4x256xf32> -> vector<4x256xf32>
    %c0_11 = arith.constant 0 : index
    %c0_12 = arith.constant 0 : index
    %14 = vector.load %arg7[%c0_11, %c0_12] : memref<4x1xf32, #tpu.memory_space<vmem>>, vector<4x1xf32>
    %15 = vector.broadcast %14 : vector<4x1xf32> to vector<4x256xf32>
    %16 = arith.addf %13, %15 : vector<4x256xf32>
    %c0_13 = arith.constant 0 : index
    %c0_14 = arith.constant 0 : index
    %c0_15 = arith.constant 0 : index
    %17 = vector.load %arg3[%c0_13, %c0_14, %c0_15] : memref<1x4x256xf32, #tpu.memory_space<vmem>>, vector<1x4x256xf32>
    %18 = vector.shape_cast %17 : vector<1x4x256xf32> to vector<4x256xf32>
    %19 = arith.subf %16, %18 : vector<4x256xf32>
    %20 = arith.mulf %19, %19 : vector<4x256xf32>
    %c0_16 = arith.constant 0 : index
    %c0_17 = arith.constant 0 : index
    %21 = vector.load %arg9[%c0_16, %c0_17] : memref<4x256xf32, #tpu.memory_space<vmem>>, vector<4x256xf32>
    %22 = arith.addf %21, %20 : vector<4x256xf32>
    %c0_18 = arith.constant 0 : index
    %c0_19 = arith.constant 0 : index
    %23 = vector.load %arg9[%c0_18, %c0_19] : memref<4x256xf32, #tpu.memory_space<vmem>>, vector<4x256xf32>
    tpu.vector_store %arg9[%c0_18, %c0_19], %22 {strides = array<i32>} : memref<4x256xf32, #tpu.memory_space<vmem>>, vector<4x256xf32>,
    %c0_i32_20 = arith.constant 0 : i32
    %24 = arith.cmpi eq, %arg1, %c0_i32_20 : i32
    %25 = arith.extui %24 : i1 to i32
    %c0_i32_21 = arith.constant 0 : i32
    %26 = arith.cmpi ne, %25, %c0_i32_21 : i32
    scf.if %26 {
      %c0_22 = arith.constant 0 : index
      %c0_23 = arith.constant 0 : index
      %27 = vector.load %arg9[%c0_22, %c0_23] : memref<4x256xf32, #tpu.memory_space<vmem>>, vector<4x256xf32>
      %28 = vector.shape_cast %27 : vector<4x256xf32> to vector<1x4x256xf32>
      %cst_24 = arith.constant dense<0.000000e+00> : vector<1xf32>
      %29 = vector.multi_reduction <add>, %28, %cst_24 [1, 2] : vector<1x4x256xf32> to vector<1xf32>
      %30 = vector.shape_cast %29 : vector<1xf32> to vector<1x1x1xf32>
      %31 = vector.extract %30[0, 0, 0] : f32 from vector<1x1x1xf32>
      %32 = vector.broadcast %31 : f32 to vector<1x1xf32>
      %c0_25 = arith.constant 0 : index
      %c0_26 = arith.constant 0 : index
      %c0_27 = arith.constant 0 : index
      %33 = vector.load %arg8[%c0_25, %c0_26, %c0_27] : memref<1x1x1xf32, #tpu.memory_space<vmem>>, vector<1x1x1xf32>
      %34 = vector.shape_cast %33 : vector<1x1x1xf32> to vector<1x1xf32>
      %35 = vector.shape_cast %32 : vector<1x1xf32> to vector<1x1x1xf32>
      tpu.vector_store %arg8[%c0_25, %c0_26, %c0_27], %35 {strides = array<i32>} : memref<1x1x1xf32, #tpu.memory_space<vmem>>, vector<1x1x1xf32>,
    } else {
    }
    return
  }
  func.func @transform_0(%arg0: i32, %arg1: i32) -> (i32, i32, i32) {
    %c0_i32 = arith.constant 0 : i32
    %c0_i32_0 = arith.constant 0 : i32
    return %arg0, %c0_i32, %arg1 : i32, i32, i32
  }
  func.func @transform_1(%arg0: i32, %arg1: i32) -> (i32, i32, i32) {
    %c0_i32 = arith.constant 0 : i32
    %c0_i32_0 = arith.constant 0 : i32
    return %arg0, %c0_i32, %arg1 : i32, i32, i32
  }
  func.func @transform_2(%arg0: i32, %arg1: i32) -> (i32, i32) {
    %c0_i32 = arith.constant 0 : i32
    %c0_i32_0 = arith.constant 0 : i32
    %c0_i32_1 = arith.constant 0 : i32
    return %c0_i32, %c0_i32_0 : i32, i32
  }
  func.func @transform_3(%arg0: i32, %arg1: i32) -> (i32, i32) {
    %c0_i32 = arith.constant 0 : i32
    %c0_i32_0 = arith.constant 0 : i32
    %c0_i32_1 = arith.constant 0 : i32
    return %c0_i32, %c0_i32_0 : i32, i32
  }
  func.func @transform_4(%arg0: i32, %arg1: i32) -> (i32, i32) {
    %c0_i32 = arith.constant 0 : i32
    %c0_i32_0 = arith.constant 0 : i32
    %c0_i32_1 = arith.constant 0 : i32
    return %c0_i32, %c0_i32_0 : i32, i32
  }
  func.func @transform_5(%arg0: i32, %arg1: i32) -> (i32, i32) {
    %c0_i32 = arith.constant 0 : i32
    %c0_i32_0 = arith.constant 0 : i32
    %c0_i32_1 = arith.constant 0 : i32
    return %c0_i32, %c0_i32_0 : i32, i32
  }
  func.func @transform_6(%arg0: i32, %arg1: i32) -> (i32, i32, i32) {
    %c0_i32 = arith.constant 0 : i32
    %c0_i32_0 = arith.constant 0 : i32
    %c0_i32_1 = arith.constant 0 : i32
    return %arg0, %c0_i32, %c0_i32_0 : i32, i32, i32
  }
}

</mosaic_0001>

<bundles_post_ra>
// kernel: tpu_custom_call.1
= control target key start
LH: loop header
LB: loop body
LE: loop exit
PB: predicated region body
PF: predicated region fallthrough
CT: control target
= control target key end

     0   :  { %s725_s21 = smov 0   ;;  %s727_s22 = smov 0   ;;  %s810_s0 = inlined_call_operand.vmem [shape: f32[2,4,256], index: 0, kind: input, shape index: {}]   ;;  %s811_s1 = inlined_call_operand.vmem [shape: f32[2,4,256], index: 1, kind: input, shape index: {}]   ;;  %s812_s2 = inlined_call_operand.vmem [shape: f32[32,4], index: 2, kind: input, shape index: {}]   ;;  %s813_s3 = inlined_call_operand.vmem [shape: f32[32,1], index: 3, kind: input, shape index: {}]   ;;  %s814_s4 = inlined_call_operand.vmem [shape: f32[4,32], index: 4, kind: input, shape index: {}]   ;;  %s815_s5 = inlined_call_operand.vmem [shape: f32[4,1], index: 5, kind: input, shape index: {}]   ;;  %s816_s6 = inlined_call_operand.vmem [shape: f32[2,1,1], index: 6, kind: output, shape index: {}]  }
   0x1   :  { %s729_s23 = smov 0  }
   0x2 LB: > { %s28_s24 = sadd.s32 1, %s683_s22  ;;  %p612_p0 = scmp.ge.s32.totalorder %s687_s23, 1  ;;  %s687_s23 = sphi %s729_s23, %s16_s23   ;;  %s683_s22 = sphi %s727_s22, %s818_s22   ;;  %s679_s21 = sphi %s725_s21, %s817_s21  }
   0x3   : > { %p30_p1 = scmp.ge.s32.totalorder %s28_s24, 2  ;;  %p248_p2 = scmp.lt.s32.totalorder %s687_s23, 3 }
   0x5   : > { %s820_s24 = smov (%p30_p1, %s28_s24), 0  ;;  %p249_p3 = pnand %p612_p0, %p248_p2 }
   0x6   : > { %p290_p4 = scmp.lt.s32.totalorder (!%p249_p3), %s679_s21, 1 }
   0x7   : > { %252 = sbr.rel (%p249_p3) target bundleno = 509 (0x1fd), region = 44 }
   0xc   : > { %v689_v0 = vmov 0   ;;  %v323_v1 = vld [vmem:[%s813_s3 + $0x8] sm:$0xff]  ;;  %v325_v2 = vld [vmem:[%s813_s3 + $0x18] sm:$0xff]  ;;  %s822_s21 = smov (!%p290_p4, %s679_s21), 1  ;;  %v322_v4 = vld [vmem:[%s813_s3] sm:$0xff]  ;;  %vm363_vm0 = vcmask 1043456  }
   0xd   : > { %663 = vset.pattern.permute.xlu1 %v689_v0  ;;  %662 = vset.pattern.permute.xlu0 %v689_v0  ;;  %s631_s29 = sshll.u32 %s822_s21, 3  ;;  %v324_v5 = vld [vmem:[%s813_s3 + $0x10] sm:$0xff]  ;;  %v318_v7 = vld [vmem:[%s812_s2] sm:$0xff]  ;;  %vm350_vm1 = vcmask 31744   ;;  %v321_v10 = vld [vmem:[%s812_s2 + $0x18] sm:$0xff]  ;;  %vm441_vm2 = vcmask 261120   ;;  %s311_s10 = scalar_lea.vmem %s816_s6, %s822_s21 }
   0xe   : > { %333 = vperm.xlu1 %663, %v323_v1   ;;  %343 = vperm.xlu0 %662, %v325_v2   ;;  %s297_s8 = scalar_lea.vmem %s810_s0, %s631_s29  ;;  %s307_s15 = scalar_lea.vmem %s811_s1, %s631_s29  ;;  %v319_v11 = vld [vmem:[%s812_s2 + $0x8] sm:$0xff]  ;;  %v320_v12 = vld [vmem:[%s812_s2 + $0x10] sm:$0xff]  ;;  %v435_v13 = vld [vmem:[%s815_s5] sm:$0xf]  ;;  %vm527_vm3 = vcmask 0  }
   0xf   : > { %664 = vset.pattern.permute.xlu2 %v689_v0  ;;  %v317_v3 = vld [vmem:[%s297_s8] sm:$0xff] }
  0x10   : > { %347 = vst [vmem:[#allocation1] ss:$2 sm:$0xff] %v317_v3  ;;  %v485_v6 = vld [vmem:[%s307_s15] sm:$0xff]  ;;  %438 = vperm.xlu2 %664, %v435_v13  }
  0x11   : > { %v434_v41 = vld [vmem:[%s814_s4] sm:$0xf] }
  0x16   : > { %328 = vperm.xlu1 %663, %v322_v4   ;;  %338 = vperm.xlu0 %662, %v324_v5  }
  0x17   : > { %v348_v8 = vld.sshfl [vmem:[#allocation1] sm:$0xff pattern:$0x75316420]  ;;  %v349_v9 = vld.sshfl [vmem:[#allocation1 + $0x8] sm:$0xff pattern:$0x75316420] }
  0x18   : > { %617 = vmatpush.msk.msra.mxu0 %vm363_vm0, %v348_v8  ;;  %622 = vmatpush.msk.msra.mxu1 %vm363_vm0, %v349_v9  ;;  %487 = vst [vmem:[#allocation1] ss:$2 sm:$0xff] %v485_v6 }
  0x19   : > { %618 = vmatmul.msk.f32.vlgmr.msra.gmra.mxu0 %vm350_vm1, %v318_v7  ;;  %623 = vmatmul.msk.f32.vlgmr.msra.gmra.mxu1 %vm350_vm1, %v318_v7 }
  0x1a   : > { %633 = vmatpush.msk.msra.mxu2 %vm363_vm0, %v348_v8  ;;  %634 = vmatpush.msk.msra.mxu3 %vm363_vm0, %v349_v9 }
  0x1b   : > { %621 = vmatmul.msk.f32.vlgmr.msra.gmra.mxu2 %vm350_vm1, %v321_v10  ;;  %626 = vmatmul.msk.f32.vlgmr.msra.gmra.mxu3 %vm350_vm1, %v321_v10 }
  0x1f   : > { %v489_v46 = vld.sshfl [vmem:[#allocation1 + $0x8] sm:$0xff pattern:$0x75316420]  ;;  %v488_v48 = vld.sshfl [vmem:[#allocation1] sm:$0xff pattern:$0x75316420] }
  0x21   : > { %619 = vmatmul.msk.f32.gmra.mxu0 %vm350_vm1, %v319_v11  ;;  %624 = vmatmul.msk.f32.gmra.mxu1 %vm350_vm1, %v319_v11 }
  0x29   : > { %620 = vmatmul.msk.f32.gmra.mxu0 %vm350_vm1, %v320_v12  ;;  %625 = vmatmul.msk.f32.gmra.mxu1 %vm350_vm1, %v320_v12 }
  0x6a   : > { %v439_v43 = vpop.permute.xlu2 %438 }
  0x80   : > { %v344_v16 = vpop.permute.xlu0 %343  ;;  %v334_v17 = vpop.permute.xlu1 %333 }
  0x88   : > { %v339_v26 = vpop.permute.xlu0 %338  ;;  %v329_v28 = vpop.permute.xlu1 %328 }
  0x96   : > { %v385_v14 = vpop.f32.mrf.mxu0  ;;  %v414_v15 = vpop.f32.mrf.mxu1 }
  0x97   : > { %v386_v34 = vadd.f32 %v385_v14, %v329_v28  ;;  %v415_v36 = vadd.f32 %v414_v15, %v329_v28 }
  0x99   : > { %v426_v40 = vmax.f32 %v386_v34, 0.0  ;;  %v427_v42 = vmax.f32 %v415_v36, 0.0 }
  0x9e   : > { %v388_v18 = vpop.f32.mrf.mxu0  ;;  %v394_v19 = vpop.f32.mrf.mxu2 }
  0x9f   : > { %v395_v20 = vadd.f32 %v394_v19, %v344_v16  ;;  %v417_v21 = vpop.f32.mrf.mxu1  ;;  %v423_v22 = vpop.f32.mrf.mxu3  ;;  %v389_v29 = vadd.f32 %v388_v18, %v334_v17 }
  0xa0   : > { %v424_v23 = vadd.f32 %v423_v22, %v344_v16  ;;  %v418_v32 = vadd.f32 %v417_v21, %v334_v17 }
  0xa1   : > { %v432_v24 = vmax.f32 %v395_v20, 0.0  ;;  %v428_v38 = vmax.f32 %v389_v29, 0.0 }
  0xa2   : > { %v433_v25 = vmax.f32 %v424_v23, 0.0  ;;  %v429_v39 = vmax.f32 %v418_v32, 0.0 }
  0xa3   : > { %457 = vmatpush.msrb.mxu2 %v432_v24 }
  0xa4   : > { %477 = vmatpush.msrb.mxu3 %v433_v25 }
  0xa6   : > { %v391_v27 = vpop.f32.mrf.mxu0 }
  0xa7   : > { %v392_v30 = vadd.f32 %v391_v27, %v339_v26  ;;  %v420_v31 = vpop.f32.mrf.mxu1 }
  0xa8   : > { %v421_v33 = vadd.f32 %v420_v31, %v339_v26 }
  0xa9   : > { %v430_v35 = vmax.f32 %v392_v30, 0.0 }
  0xaa   : > { %v431_v37 = vmax.f32 %v421_v33, 0.0 }
  0xab   : > { %458 = vmatpush.msrb.mxu2 %v430_v35 }
  0xac   : > { %478 = vmatpush.msrb.mxu3 %v431_v37 }
  0xad   : > { %459 = vmatpush.msrb.mxu2 %v428_v38 }
  0xae   : > { %479 = vmatpush.msrb.mxu3 %v429_v39 }
  0xaf   : > { %460 = vmatpush.msrb.mxu2 %v426_v40 }
  0xb0   : > { %480 = vmatpush.msrb.mxu3 %v427_v42  ;;  %627 = vmatmul.msk.f32.vlgmr.msrb.gmra.mxu2 %vm441_vm2, %v434_v41 }
  0xb1   : > { %628 = vmatmul.msk.f32.vlgmr.msrb.gmra.mxu3 %vm441_vm2, %v434_v41 }
 0x133   : > { %v462_v44 = vpop.f32.mrf.mxu2 }
 0x134   : > { %v482_v45 = vpop.f32.mrf.mxu3  ;;  %v463_v47 = vadd.f32 %v462_v44, %v439_v43 }
 0x135   : > { %v483_v49 = vadd.f32 %v482_v45, %v439_v43 }
 0x136   : > { %v492_v51 = vsub.f32 %v463_v47, %v488_v48 }
 0x137   : > { %v493_v50 = vsub.f32 %v483_v49, %v489_v46 }
 0x138   : > { %v494_v54 = vmul.f32 %v492_v51, %v492_v51 }
 0x139   : > { %v495_v52 = vmul.f32 %v493_v50, %v493_v50 }
 0x13b   : > { %v499_v53 = vrot.slane %v495_v52, 4 }
 0x13d   : > { %v500_v55 = vsel %vm363_vm0, %v494_v54, %v499_v53 }
 0x13e   : > { %509 = vst [vmem:[#allocation1] ss:$2 sm:$0xff] %v500_v55 }
 0x145   : > { %v510_v56 = vld.sshfl [vmem:[#allocation1] sm:$0xff pattern:$0x75316420]  ;;  %v511_v57 = vld.sshfl [vmem:[#allocation1 + $0x8] sm:$0xff pattern:$0x75316420] }
 0x146   : > { %v514_v58 = vsel %vm363_vm0, %v510_v56, 0.0  ;;  %v515_v59 = vsel %vm363_vm0, %v511_v57, 0.0 }
 0x147   : > { %v516_v60 = vadd.f32 %v515_v59, %v514_v58 }
 0x149   : > { %517 = vadd.xlane.f32.xlu2 %v516_v60 }
 0x1bc   : > { %v518_v61 = vpop.xlane.xlu2 %517 }
 0x1bd   : > { %v519_v62 = vrot.slane %v518_v61, 4 }
 0x1bf   : > { %v520_v63 = vadd.f32 %v519_v62, %v518_v61 }
 0x1c1   : > { %v521_v0 = vrot.slane %v520_v63, 2 }
 0x1c3   : > { %v522_v1 = vadd.f32 %v521_v0, %v520_v63 }
 0x1c5   : > { %v523_v2 = vrot.slane %v522_v1, 1 }
 0x1c7   : > { %v524_v3 = vadd.f32 %v523_v2, %v522_v1 }
 0x1c9   : > { %635 = vpush %v524_v3 }
 0x1fa   : > { %s636_s11 = spop %635 }
 0x1fb   : > { %v526_v4 = vstv %s636_s11 }
 0x1fc   : > { %528 = vst.msk [vmem:[%s311_s10] sm:$0x1] %vm527_vm3, %v526_v4 }
 0x1fd PF: > { %s16_s23 = sadd.s32 1, %s687_s23   ;;  %s817_s21 = smov %s683_s22 }
 0x1fe   : > { %p13_p5 = scmp.ge.s32.totalorder %s16_s23, 4   ;;  %s818_s22 = smov %s820_s24 }
 0x200   :  { %15 = sbr.rel (!%p13_p5) target bundleno = 2 (0x2), region = 85 }

</bundles_post_ra>
